<compile_context>
chip_gen: v5e
topology: v5e:2x2
jax: 0.10.0
libtpu: 0.0.40
codegen_flags: <defaults>
</compile_context>

<pallas_src>
import functools

import jax
import jax.numpy as jnp
from jax.experimental import pallas as pl
from jax.experimental.pallas import tpu as pltpu


def _round_up(x, m):
    return ((x + m - 1) // m) * m


def _fused_conv_kernel(x_ref, w_ref, b_ref, o_ref, *, taps, kw, wp, mv):
    """One block of Nb images per grid step, ONE MXU matmul total.

    x_ref: (Nb, Cin, L)      zero-padded images, spatial dims flattened
                             (stride>1 path: Cin == KH*KW*Cin_orig and taps == 1)
    w_ref: (Cout, taps*Cin)  tap-major fused weight
    b_ref: (Cout, 1)         bias (f32)
    o_ref: (Nb, Cout, MV)    MV = round_up(valid virtual outputs, 128)
    """
    nb = x_ref.shape[0]
    per_image = []
    for n in range(nb):                       # static unroll over the block
        xv = x_ref[n]                         # (Cin, L) — one vld pass per image
        cols = []
        for t in range(taps):                 # tap slices: contiguous lane reads
            off = (t // kw) * wp + (t % kw)
            cols.append(xv[:, off:off + mv])
        # Stack taps along the contraction (sublane) axis.
        per_image.append(cols[0] if taps == 1 else jnp.concatenate(cols, axis=0))
    # Stack images along the lane axis -> one matmul feeds the whole block.
    x_all = per_image[0] if nb == 1 else jnp.concatenate(per_image, axis=1)
    acc = jnp.dot(w_ref[...], x_all, preferred_element_type=jnp.float32)
    acc = acc + b_ref[...]                    # broadcast bias over lanes
    for n in range(nb):                       # 128-aligned, full-width stores
        o_ref[n] = acc[:, n * mv:(n + 1) * mv].astype(o_ref.dtype)


@functools.partial(jax.jit, static_argnames=("kernel_size", "stride", "padding"))
def gaussian_vae2d_forward(x, weight, bias, *, kernel_size, stride, padding):
    """Forward of GaussianVAE2D: mu = Conv2d(x).  x: (N, Cin, H, W) NCHW."""
    n, cin, h, w = x.shape
    cout = weight.shape[0]
    kh = kw = kernel_size
    s, p = stride, padding

    hp, wp = h + 2 * p, w + 2 * p
    ho = (hp - kh) // s + 1
    wo = (wp - kw) // s + 1

    # Tap-major fused weight: column t*Cin + c  <->  weight[:, c, t//kw, t%kw].
    w_all = jnp.transpose(weight, (0, 2, 3, 1)).reshape(cout, kh * kw * cin)
    b2d = bias.reshape(cout, 1).astype(jnp.float32)

    if s == 1:
        # One "virtual" output per padded column; wrap columns sliced off later.
        mv = ho * wp
        mv_pad = _round_up(mv, 128)
        required_l = (kh - 1) * wp + (kw - 1) + mv_pad   # farthest tap slice end
        hp_ext = max(hp, -(-required_l // wp))
        l = hp_ext * wp
        # Single fused pad: conv zero-padding + extra zero rows for tail reads.
        x_in = jnp.pad(
            x, ((0, 0), (0, 0), (p, p + (hp_ext - hp)), (p, p))
        ).reshape(n, cin, l)
        taps, kern_wp = kh * kw, wp
    else:
        # De-stride outside the kernel: per-tap XLA strided slices build a
        # tap-stacked (N, KH*KW*Cin, Ho*Wo) tensor so the kernel only ever does
        # stride-1, contiguous lane reads (and becomes a pure matmul, taps == 1).
        mv = ho * wo
        mv_pad = _round_up(mv, 128)
        xp = jnp.pad(x, ((0, 0), (0, 0), (p, p), (p, p)))
        tap_slabs = [
            xp[:, :, i:i + s * (ho - 1) + 1:s, j:j + s * (wo - 1) + 1:s]
            .reshape(n, cin, ho * wo)
            for i in range(kh) for j in range(kw)
        ]
        x_in = jnp.pad(jnp.concatenate(tap_slabs, axis=1),
                       ((0, 0), (0, 0), (0, mv_pad - mv)))
        l = mv_pad
        taps, kern_wp = 1, wp

    cin_eff = x_in.shape[1]

    # Fold the batch: at most two grid blocks (one per v7x TensorCore); the rest
    # of the batch goes into the lane axis of each block's single matmul.
    num_blocks = 2 if n >= 2 else 1
    nb = -(-n // num_blocks)
    n_pad = num_blocks * nb
    if n_pad != n:
        x_in = jnp.pad(x_in, ((0, n_pad - n), (0, 0), (0, 0)))

    kernel = functools.partial(
        _fused_conv_kernel, taps=taps, kw=kw, wp=kern_wp, mv=mv_pad)

    out_v = pl.pallas_call(
        kernel,
        out_shape=jax.ShapeDtypeStruct((n_pad, cout, mv_pad), x.dtype),
        grid_spec=pltpu.PrefetchScalarGridSpec(
            num_scalar_prefetch=0,
            grid=(num_blocks,),                              # one image-block per step
            in_specs=[
                pl.BlockSpec((nb, cin_eff, l), lambda b: (b, 0, 0)),
                pl.BlockSpec((cout, kh * kw * cin), lambda b: (0, 0)),
                pl.BlockSpec((cout, 1), lambda b: (0, 0)),
            ],
            out_specs=pl.BlockSpec((nb, cout, mv_pad), lambda b: (b, 0, 0)),
        ),
        compiler_params=pltpu.CompilerParams(
            dimension_semantics=("parallel",),               # megacore: blocks split across TCs
        ),
    )(x_in, w_all, b2d)

    out_v = out_v[:n]                                        # drop padded images
    if s == 1:
        # Keep valid virtual columns -> NCHW (no transpose, just reshape + slice).
        mu = out_v[:, :, :ho * wp].reshape(n, cout, ho, wp)[:, :, :, :wo]
    else:
        mu = out_v[:, :, :ho * wo].reshape(n, cout, ho, wo)
    return mu


# TODO(synk): sample() adds torch.randn noise on CUDA; only forward() (mu) is implemented here.


if __name__ == "__main__":
    # Module hyperparameters (UNIT-style VAE head): n_in=4, n_out=8, k=3, s=1, p=1.
    N, C_IN, H, W = 2, 4, 16, 16
    C_OUT, KSIZE, STRIDE, PAD = 8, 3, 1, 1

    key = jax.random.PRNGKey(0)
    kx, k_w, kb = jax.random.split(key, 3)

    x = jax.random.normal(kx, (N, C_IN, H, W), dtype=jnp.float32)
    # reset_parameters(): weight, bias ~ Normal(0, 0.002)
    weight = 0.002 * jax.random.normal(
        k_w, (C_OUT, C_IN, KSIZE, KSIZE), dtype=jnp.float32)
    bias = 0.002 * jax.random.normal(kb, (C_OUT,), dtype=jnp.float32)

    def conv_ref(x_, w_, b_, s_, p_):
        return jax.lax.conv_general_dilated(
            x_, w_, window_strides=(s_, s_), padding=((p_, p_), (p_, p_)),
            dimension_numbers=("NCHW", "OIHW", "NCHW"),
        ) + b_.reshape(1, -1, 1, 1)

    # Primary check: the module's configuration (stride=1 fused-tap path).
    mu = gaussian_vae2d_forward(
        x, weight, bias, kernel_size=KSIZE, stride=STRIDE, padding=PAD)
    mu = jax.block_until_ready(mu)
    ref = conv_ref(x, weight, bias, STRIDE, PAD)
    assert mu.shape == ref.shape == (N, C_OUT, H, W)
    assert float(jnp.max(jnp.abs(mu - ref))) < 1e-4

    # Secondary check: exercise the stride>1 (de-strided-in-wrapper) path.
    mu2 = gaussian_vae2d_forward(
        x, weight, bias, kernel_size=KSIZE, stride=2, padding=PAD)
    mu2 = jax.block_until_ready(mu2)
    ref2 = conv_ref(x, weight, bias, 2, PAD)
    assert mu2.shape == ref2.shape
    assert float(jnp.max(jnp.abs(mu2 - ref2))) < 1e-4

    print("KERNEL_OK")
</pallas_src>

<mosaic_0001>
module attributes {stable_mosaic.version = 11 : i64} {
  func.func @_fused_conv_kernel(%arg0: i32, %arg1: memref<1x4x432xf32, #tpu.memory_space<vmem>>, %arg2: memref<8x36xf32, #tpu.memory_space<vmem>>, %arg3: memref<8x1xf32, #tpu.memory_space<vmem>>, %arg4: memref<1x8x384xf32, #tpu.memory_space<vmem>>) attributes {dimension_semantics = [#tpu.dimension_semantics<parallel>], iteration_bounds = array<i64: 2>, scalar_prefetch = 0 : i64, scratch_operands = 0 : i64, tpu.core_type = #tpu.core_type<tc>, window_params = [{transform_indices = @transform_0, window_bounds = array<i64: 1, 4, 432>}, {pipeline_mode = #tpu.pipeline_mode<synchronous>, transform_indices = @transform_1, window_bounds = array<i64: 8, 36>}, {pipeline_mode = #tpu.pipeline_mode<synchronous>, transform_indices = @transform_2, window_bounds = array<i64: 8, 1>}, {transform_indices = @transform_3, window_bounds = array<i64: 1, 8, 384>}]} {
    %c0 = arith.constant 0 : index
    %c0_0 = arith.constant 0 : index
    %c0_1 = arith.constant 0 : index
    %0 = vector.load %arg1[%c0, %c0_0, %c0_1] : memref<1x4x432xf32, #tpu.memory_space<vmem>>, vector<1x4x432xf32>
    %1 = vector.shape_cast %0 : vector<1x4x432xf32> to vector<4x432xf32>
    %2 = vector.extract_strided_slice %1 {offsets = [0, 0], sizes = [4, 384], strides = [1, 1]} : vector<4x432xf32> to vector<4x384xf32>
    %3 = vector.extract_strided_slice %1 {offsets = [0, 1], sizes = [4, 384], strides = [1, 1]} : vector<4x432xf32> to vector<4x384xf32>
    %4 = vector.extract_strided_slice %1 {offsets = [0, 2], sizes = [4, 384], strides = [1, 1]} : vector<4x432xf32> to vector<4x384xf32>
    %5 = vector.extract_strided_slice %1 {offsets = [0, 18], sizes = [4, 384], strides = [1, 1]} : vector<4x432xf32> to vector<4x384xf32>
    %6 = vector.extract_strided_slice %1 {offsets = [0, 19], sizes = [4, 384], strides = [1, 1]} : vector<4x432xf32> to vector<4x384xf32>
    %7 = vector.extract_strided_slice %1 {offsets = [0, 20], sizes = [4, 384], strides = [1, 1]} : vector<4x432xf32> to vector<4x384xf32>
    %8 = vector.extract_strided_slice %1 {offsets = [0, 36], sizes = [4, 384], strides = [1, 1]} : vector<4x432xf32> to vector<4x384xf32>
    %9 = vector.extract_strided_slice %1 {offsets = [0, 37], sizes = [4, 384], strides = [1, 1]} : vector<4x432xf32> to vector<4x384xf32>
    %10 = vector.extract_strided_slice %1 {offsets = [0, 38], sizes = [4, 384], strides = [1, 1]} : vector<4x432xf32> to vector<4x384xf32>
    %11 = tpu.concatenate %2, %3, %4, %5, %6, %7, %8, %9, %10 in 0 : vector<4x384xf32>, vector<4x384xf32>, vector<4x384xf32>, vector<4x384xf32>, vector<4x384xf32>, vector<4x384xf32>, vector<4x384xf32>, vector<4x384xf32>, vector<4x384xf32> -> vector<36x384xf32>
    %c0_2 = arith.constant 0 : index
    %c0_3 = arith.constant 0 : index
    %12 = vector.load %arg2[%c0_2, %c0_3] : memref<8x36xf32, #tpu.memory_space<vmem>>, vector<8x36xf32>
    %cst = arith.constant dense<0.000000e+00> : vector<8x384xf32>
    %13 = tpu.matmul %12, %11, %cst {dimension_numbers = #tpu.dot_dimension_numbers<[1], [0], [0], [1], [0, 0, 1, 1], [], []>} : vector<8x36xf32>, vector<36x384xf32>, vector<8x384xf32> -> vector<8x384xf32>
    %c0_4 = arith.constant 0 : index
    %c0_5 = arith.constant 0 : index
    %14 = vector.load %arg3[%c0_4, %c0_5] : memref<8x1xf32, #tpu.memory_space<vmem>>, vector<8x1xf32>
    %15 = vector.broadcast %14 : vector<8x1xf32> to vector<8x384xf32>
    %16 = arith.addf %13, %15 : vector<8x384xf32>
    %c0_6 = arith.constant 0 : index
    %c0_7 = arith.constant 0 : index
    %c0_8 = arith.constant 0 : index
    %17 = vector.load %arg4[%c0_6, %c0_7, %c0_8] : memref<1x8x384xf32, #tpu.memory_space<vmem>>, vector<1x8x384xf32>
    %18 = vector.shape_cast %17 : vector<1x8x384xf32> to vector<8x384xf32>
    %19 = vector.shape_cast %16 : vector<8x384xf32> to vector<1x8x384xf32>
    tpu.vector_store %arg4[%c0_6, %c0_7, %c0_8], %19 {strides = array<i32>} : memref<1x8x384xf32, #tpu.memory_space<vmem>>, vector<1x8x384xf32>,
    return
  }
  func.func @transform_0(%arg0: i32) -> (i32, i32, i32) {
    %c0_i32 = arith.constant 0 : i32
    %c0_i32_0 = arith.constant 0 : i32
    %c0_i32_1 = arith.constant 0 : i32
    return %arg0, %c0_i32, %c0_i32_0 : i32, i32, i32
  }
  func.func @transform_1(%arg0: i32) -> (i32, i32) {
    %c0_i32 = arith.constant 0 : i32
    %c0_i32_0 = arith.constant 0 : i32
    %c0_i32_1 = arith.constant 0 : i32
    return %c0_i32, %c0_i32_0 : i32, i32
  }
  func.func @transform_2(%arg0: i32) -> (i32, i32) {
    %c0_i32 = arith.constant 0 : i32
    %c0_i32_0 = arith.constant 0 : i32
    %c0_i32_1 = arith.constant 0 : i32
    return %c0_i32, %c0_i32_0 : i32, i32
  }
  func.func @transform_3(%arg0: i32) -> (i32, i32, i32) {
    %c0_i32 = arith.constant 0 : i32
    %c0_i32_0 = arith.constant 0 : i32
    %c0_i32_1 = arith.constant 0 : i32
    return %arg0, %c0_i32, %c0_i32_0 : i32, i32, i32
  }
}

</mosaic_0001>

<bundles_post_ra>
// kernel: gaussian_vae2d_forward.1
= control target key start
LH: loop header
LB: loop body
LE: loop exit
PB: predicated region body
PF: predicated region fallthrough
CT: control target
= control target key end

     0   :  { %s652_s12 = smov 0   ;;  %s824_s0 = inlined_call_operand.vmem [shape: f32[2,4,432], index: 0, kind: input, shape index: {}]   ;;  %s825_s1 = inlined_call_operand.vmem [shape: f32[8,36], index: 1, kind: input, shape index: {}]   ;;  %s826_s2 = inlined_call_operand.vmem [shape: f32[8,1], index: 2, kind: input, shape index: {}]   ;;  %s827_s3 = inlined_call_operand.vmem [shape: f32[2,8,384], index: 3, kind: output, shape index: {}]  }
   0x1 LB: > { %s509_s13 = sadd.s32 4294967295, %s621_s12   ;;  %p513_p0 = scmp.ge.s32.totalorder %s621_s12, 1  ;;  %s621_s12 = sphi %s652_s12, %s13_s12  }
   0x2   : > { %p137_p1 = scmp.lt.s32.totalorder %s621_s12, 3 }
   0x4   : > { %p138_p2 = pnand %p513_p0, %p137_p1 }
   0x5   : > { %p161_p3 = scmp.lt.s32.totalorder (!%p138_p2), %s509_s13, 1  ;;  %s623_s18 = smov (!%p138_p2), 127  }
   0x6   : > { %141 = sbr.rel (%p138_p2) target bundleno = 367 (0x16f), region = 32  ;;  %s624_s19 = smov (!%p138_p2), 126  }
   0x7   : > { %s625_s20 = smov (!%p138_p2), 110   ;;  %s626_s21 = smov (!%p138_p2), 109  }
   0x8   : > { %s627_s22 = smov (!%p138_p2), 108   ;;  %s628_s23 = smov (!%p138_p2), 92  }
   0x9   : > { %s629_s24 = smov (!%p138_p2), 91   ;;  %s630_s25 = smov (!%p138_p2), 90  }
   0xb   : > { %s829_s13 = smov (!%p161_p3, %s509_s13), 1  ;;  %v375_v62 = vld [vmem:[%s826_s2] sm:$0xff]  ;;  %v631_v63 = vmov 0   ;;  %vm357_vm0 = vcmask 736256   ;;  %vm312_vm1 = vcmask 752640   ;;  %vm335_vm2 = vcmask 744448  }
   0xc   : > { %s525_s14 = sshll.u32 %s829_s13, 4  ;;  %614 = vset.pattern.permute.xlu0 %v631_v63  ;;  %vm267_vm3 = vcmask 891904   ;;  %vm290_vm4 = vcmask 883712   ;;  %vm361_vm5 = vcmask 1043456   ;;  %vm222_vm6 = vcmask 1031168   ;;  %s526_s30 = smul.u32 24, %s829_s13 }
   0xd   : > { %s165_s17 = scalar_lea.vmem %s824_s0, %s525_s14  ;;  %vm245_vm7 = vcmask 900096   ;;  %vm200_vm8 = vcmask 1039360   ;;  %vm381_vm9 = vcmask 293888  }
   0xe   : > { %v666_v0 = vld [vmem:[%s165_s17 + $0x8] sm:$0xff]  ;;  %v668_v1 = vld [vmem:[%s165_s17] sm:$0xff]  ;;  %s170_s6 = scalar_lea.vmem %s827_s3, %s526_s30 }
   0xf   : > { %177 = vst [vmem:[#allocation1 + $0x10] ss:$2 sm:$0xff] %v666_v0 }
  0x10   : > { %175 = vst [vmem:[#allocation1] ss:$2 sm:$0xff] %v668_v1 }
  0x16   : > { %v672_v2 = vld.sshfl [vmem:[#allocation1 + $0x10] sm:$0xff pattern:$0x75316420] }
  0x17   : > { %187 = vst [vmem:[#allocation1 + $0x11] ss:$2 sm:$0xff] %v666_v0  ;;  %v675_v3 = vld.sshfl [vmem:[#allocation1] sm:$0xff pattern:$0x75316420] }
  0x18   : > { %v677_v4 = vld.sshfl [vmem:[#allocation1 + $0x8] sm:$0xff pattern:$0x75316420] }
  0x19   : > { %185 = vst [vmem:[#allocation1 + $0x1] ss:$2 sm:$0xff] %v668_v1 }
  0x1e   : > { %v190_v5 = vld.sshfl [vmem:[#allocation1 + $0x10] sm:$0xff pattern:$0x75316420]  ;;  %v191_v6 = vld.sshfl [vmem:[#allocation1 + $0x18] sm:$0xff pattern:$0x75316420] }
  0x1f   : > { %v544_v7 = vpack.i.bf16 %v191_v6, %v190_v5  ;;  %209 = vst [vmem:[#allocation1 + $0x10] ss:$2 sm:$0xff] %v666_v0 }
  0x20   : > { %v681_v8 = vld.sshfl [vmem:[#allocation1] sm:$0xff pattern:$0x75316420]  ;;  %v683_v9 = vld.sshfl [vmem:[#allocation1 + $0x8] sm:$0xff pattern:$0x75316420] }
  0x21   : > { %545 = vrot.lane.b32.xlu1 %v544_v7, %s623_s18  ;;  %207 = vst [vmem:[#allocation1] ss:$2 sm:$0xff] %v668_v1  ;;  %v609_v30 = vpack.i.bf16 %v683_v9, %v681_v8 }
  0x26   : > { %v212_v10 = vld.sshfl [vmem:[#allocation1 + $0x10] sm:$0xff pattern:$0x75316420]  ;;  %v213_v11 = vld.sshfl [vmem:[#allocation1 + $0x18] sm:$0xff pattern:$0x75316420] }
  0x27   : > { %232 = vst [vmem:[#allocation1 + $0x11] ss:$2 sm:$0xff] %v666_v0  ;;  %v549_v12 = vpack.i.bf16 %v213_v11, %v212_v10 }
  0x28   : > { %v688_v13 = vld.sshfl [vmem:[#allocation1] sm:$0xff pattern:$0x75316420]  ;;  %v690_v14 = vld.sshfl [vmem:[#allocation1 + $0x8] sm:$0xff pattern:$0x75316420] }
  0x29   : > { %550 = vrot.lane.b32.xlu0 %v549_v12, %s624_s19  ;;  %230 = vst [vmem:[#allocation1 + $0x1] ss:$2 sm:$0xff] %v668_v1  ;;  %v599_v37 = vpack.i.bf16 %v690_v14, %v688_v13 }
  0x2e   : > { %v235_v15 = vld.sshfl [vmem:[#allocation1 + $0x10] sm:$0xff pattern:$0x75316420]  ;;  %v236_v16 = vld.sshfl [vmem:[#allocation1 + $0x18] sm:$0xff pattern:$0x75316420] }
  0x2f   : > { %254 = vst [vmem:[#allocation1 + $0x10] ss:$2 sm:$0xff] %v666_v0  ;;  %v554_v17 = vpack.i.bf16 %v236_v16, %v235_v15 }
  0x30   : > { %v233_v18 = vld.sshfl [vmem:[#allocation1] sm:$0xff pattern:$0x75316420]  ;;  %v234_v19 = vld.sshfl [vmem:[#allocation1 + $0x8] sm:$0xff pattern:$0x75316420] }
  0x31   : > { %555 = vrot.lane.b32.xlu1 %v554_v17, %s625_s20  ;;  %252 = vst [vmem:[#allocation1] ss:$2 sm:$0xff] %v668_v1  ;;  %v604_v48 = vpack.i.bf16 %v234_v19, %v233_v18 }
  0x36   : > { %v257_v20 = vld.sshfl [vmem:[#allocation1 + $0x10] sm:$0xff pattern:$0x75316420]  ;;  %v258_v21 = vld.sshfl [vmem:[#allocation1 + $0x18] sm:$0xff pattern:$0x75316420] }
  0x37   : > { %v559_v22 = vpack.i.bf16 %v258_v21, %v257_v20  ;;  %277 = vst [vmem:[#allocation1 + $0x11] ss:$2 sm:$0xff] %v666_v0 }
  0x38   : > { %v255_v23 = vld.sshfl [vmem:[#allocation1] sm:$0xff pattern:$0x75316420]  ;;  %v256_v24 = vld.sshfl [vmem:[#allocation1 + $0x8] sm:$0xff pattern:$0x75316420] }
  0x39   : > { %560 = vrot.lane.b32.xlu2 %v559_v22, %s626_s21  ;;  %275 = vst [vmem:[#allocation1 + $0x1] ss:$2 sm:$0xff] %v668_v1  ;;  %v584_v45 = vpack.i.bf16 %v256_v24, %v255_v23 }
  0x3e   : > { %v280_v25 = vld.sshfl [vmem:[#allocation1 + $0x10] sm:$0xff pattern:$0x75316420]  ;;  %v281_v26 = vld.sshfl [vmem:[#allocation1 + $0x18] sm:$0xff pattern:$0x75316420] }
  0x3f   : > { %v564_v27 = vpack.i.bf16 %v281_v26, %v280_v25  ;;  %299 = vst [vmem:[#allocation1 + $0x10] ss:$2 sm:$0xff] %v666_v0 }
  0x40   : > { %v278_v28 = vld.sshfl [vmem:[#allocation1] sm:$0xff pattern:$0x75316420]  ;;  %v279_v29 = vld.sshfl [vmem:[#allocation1 + $0x8] sm:$0xff pattern:$0x75316420] }
  0x41   : > { %565 = vrot.lane.b32.xlu2 %v564_v27, %s627_s22  ;;  %297 = vst [vmem:[#allocation1] ss:$2 sm:$0xff] %v668_v1  ;;  %v589_v41 = vpack.i.bf16 %v279_v29, %v278_v28 }
  0x46   : > { %v302_v31 = vld.sshfl [vmem:[#allocation1 + $0x10] sm:$0xff pattern:$0x75316420]  ;;  %v303_v32 = vld.sshfl [vmem:[#allocation1 + $0x18] sm:$0xff pattern:$0x75316420] }
  0x47   : > { %v569_v33 = vpack.i.bf16 %v303_v32, %v302_v31  ;;  %322 = vst [vmem:[#allocation1 + $0x11] ss:$2 sm:$0xff] %v666_v0 }
  0x48   : > { %v300_v34 = vld.sshfl [vmem:[#allocation1] sm:$0xff pattern:$0x75316420]  ;;  %v301_v35 = vld.sshfl [vmem:[#allocation1 + $0x8] sm:$0xff pattern:$0x75316420] }
  0x49   : > { %570 = vrot.lane.b32.xlu1 %v569_v33, %s628_s23  ;;  %v574_v36 = vpack.i.bf16 %v301_v35, %v300_v34  ;;  %320 = vst [vmem:[#allocation1 + $0x1] ss:$2 sm:$0xff] %v668_v1 }
  0x4b   : > { %575 = vrot.lane.b32.xlu2 %v574_v36, %s628_s23 }
  0x4e   : > { %v325_v38 = vld.sshfl [vmem:[#allocation1 + $0x10] sm:$0xff pattern:$0x75316420]  ;;  %v326_v39 = vld.sshfl [vmem:[#allocation1 + $0x18] sm:$0xff pattern:$0x75316420] }
  0x4f   : > { %v579_v40 = vpack.i.bf16 %v326_v39, %v325_v38  ;;  %344 = vst [vmem:[#allocation1 + $0x10] ss:$2 sm:$0xff] %v666_v0 }
  0x50   : > { %v323_v42 = vld.sshfl [vmem:[#allocation1] sm:$0xff pattern:$0x75316420]  ;;  %v324_v43 = vld.sshfl [vmem:[#allocation1 + $0x8] sm:$0xff pattern:$0x75316420] }
  0x51   : > { %580 = vrot.lane.b32.xlu1 %v579_v40, %s629_s24  ;;  %v594_v44 = vpack.i.bf16 %v324_v43, %v323_v42  ;;  %342 = vst [vmem:[#allocation1] ss:$2 sm:$0xff] %v668_v1 }
  0x53   : > { %590 = vrot.lane.b32.xlu2 %v589_v41, %s627_s22  ;;  %595 = vrot.lane.b32.xlu0 %v594_v44, %s629_s24 }
  0x56   : > { %v347_v46 = vld.sshfl [vmem:[#allocation1 + $0x10] sm:$0xff pattern:$0x75316420]  ;;  %v348_v49 = vld.sshfl [vmem:[#allocation1 + $0x18] sm:$0xff pattern:$0x75316420] }
  0x58   : > { %v345_v47 = vld.sshfl [vmem:[#allocation1] sm:$0xff pattern:$0x75316420]  ;;  %v346_v50 = vld.sshfl [vmem:[#allocation1 + $0x8] sm:$0xff pattern:$0x75316420] }
  0x59   : > { %585 = vrot.lane.b32.xlu1 %v584_v45, %s626_s21 }
  0x5b   : > { %353 = vrot.lane.b32.xlu0 %v347_v46, %s630_s25  ;;  %349 = vrot.lane.b32.xlu2 %v345_v47, %s630_s25 }
  0x61   : > { %605 = vrot.lane.b32.xlu1 %v604_v48, %s625_s20 }
  0x63   : > { %355 = vrot.lane.b32.xlu0 %v348_v49, %s630_s25  ;;  %610 = vrot.lane.b32.xlu2 %v609_v30, %s623_s18 }
  0x6b   : > { %351 = vrot.lane.b32.xlu0 %v346_v50, %s630_s25  ;;  %v374_v50 = vld [vmem:[%s825_s1] sm:$0xff] }
  0x73   : > { %600 = vrot.lane.b32.xlu0 %v599_v37, %s624_s19 }
  0x7b   : > { %378 = vperm.xlu0 %614, %v375_v62  }
  0x93   : > { %v714_v51 = vpop.permute.xlu2 %560  ;;  %v716_v52 = vpop.permute.xlu1 %545 }
  0x94   : > { %v563_v0 = vunpack.i.h.bf16 %v714_v51  ;;  %v562_v6 = vunpack.i.l.bf16 %v714_v51  ;;  %v548_v19 = vunpack.i.h.bf16 %v716_v52  ;;  %v547_v20 = vunpack.i.l.bf16 %v716_v52 }
  0x96   : > { %v270_v23 = vsel %vm267_vm3, %v562_v6, %v563_v0  ;;  %v203_v36 = vsel %vm200_vm8, %v547_v20, %v548_v19 }
  0x97   : > { %v364_v46 = vsel %vm361_vm5, %v672_v2, %v203_v36 }
  0x9b   : > { %v718_v53 = vpop.permute.xlu2 %565  ;;  %v722_v55 = vpop.permute.xlu0 %550 }
  0x9c   : > { %v568_v7 = vunpack.i.h.bf16 %v718_v53  ;;  %v567_v8 = vunpack.i.l.bf16 %v718_v53  ;;  %v553_v9 = vunpack.i.h.bf16 %v722_v55  ;;  %v552_v10 = vunpack.i.l.bf16 %v722_v55 }
  0x9e   : > { %v293_v24 = vsel %vm290_vm4, %v567_v8, %v568_v7  ;;  %v225_v30 = vsel %vm222_vm6, %v552_v10, %v553_v9 }
  0x9f   : > { %v370_v32 = vsel %vm361_vm5, %v270_v23, %v293_v24 }
  0xa3   : > { %v720_v54 = vpop.permute.xlu1 %555 }
  0xa4   : > { %v558_v13 = vunpack.i.h.bf16 %v720_v54  ;;  %v557_v14 = vunpack.i.l.bf16 %v720_v54 }
  0xa5   : > { %v724_v56 = vpop.permute.xlu2 %575 }
  0xa6   : > { %v578_v25 = vunpack.i.h.bf16 %v724_v56  ;;  %v577_v26 = vunpack.i.l.bf16 %v724_v56  ;;  %v248_v31 = vsel %vm245_vm7, %v557_v14, %v558_v13 }
  0xa7   : > { %v367_v37 = vsel %vm361_vm5, %v225_v30, %v248_v31 }
  0xa8   : > { %v313_v38 = vsel %vm312_vm1, %v577_v26, %v578_v25 }
  0xad   : > { %v730_v59 = vpop.permute.xlu2 %590 }
  0xae   : > { %v592_v33 = vunpack.i.l.bf16 %v730_v59  ;;  %v593_v39 = vunpack.i.h.bf16 %v730_v59 }
  0xb0   : > { %v291_v48 = vsel %vm290_vm4, %v592_v33, %v593_v39 }
  0xb5   : > { %v350_v21 = vpop.permute.xlu2 %349 }
  0xbb   : > { %v726_v57 = vpop.permute.xlu1 %570 }
  0xbc   : > { %v573_v1 = vunpack.i.h.bf16 %v726_v57  ;;  %v572_v11 = vunpack.i.l.bf16 %v726_v57 }
  0xbd   : > { %v611_v56 = vpop.permute.xlu2 %610 }
  0xbe   : > { %v315_v16 = vsel %vm312_vm1, %v572_v11, %v573_v1  ;;  %v314_v42 = vsel %vm312_vm1, %v578_v25, %v572_v11  ;;  %v612_v59 = vunpack.i.l.bf16 %v611_v56  ;;  %v613_v63 = vunpack.i.h.bf16 %v611_v56 }
  0xc0   : > { %v201_v53 = vsel %vm200_vm8, %v612_v59, %v613_v63 }
  0xc3   : > { %v581_v60 = vpop.permute.xlu1 %580 }
  0xc4   : > { %v583_v5 = vunpack.i.h.bf16 %v581_v60  ;;  %v582_v12 = vunpack.i.l.bf16 %v581_v60 }
  0xc5   : > { %v728_v58 = vpop.permute.xlu0 %595 }
  0xc6   : > { %v338_v17 = vsel %vm335_vm2, %v582_v12, %v583_v5  ;;  %v598_v28 = vunpack.i.h.bf16 %v728_v58  ;;  %v597_v29 = vunpack.i.l.bf16 %v728_v58  ;;  %v292_v58 = vsel %vm290_vm4, %v593_v39, %v567_v8 }
  0xc7   : > { %v373_v27 = vsel %vm361_vm5, %v315_v16, %v338_v17  ;;  %v362_v16 = vsel %vm361_vm5, %v675_v3, %v201_v53 }
  0xc8   : > { %v336_v41 = vsel %vm335_vm2, %v597_v29, %v598_v28  ;;  %v337_v43 = vsel %vm335_vm2, %v598_v28, %v582_v12  ;;  %v202_v12 = vsel %vm200_vm8, %v613_v63, %v547_v20 }
  0xc9   : > { %v371_v51 = vsel %vm361_vm5, %v313_v38, %v336_v41  ;;  %v372_v2 = vsel %vm361_vm5, %v314_v42, %v337_v43  ;;  %v363_v55 = vsel %vm361_vm5, %v677_v4, %v202_v12 }
  0xcb   : > { %v586_v22 = vpop.permute.xlu1 %585 }
  0xcc   : > { %v588_v34 = vunpack.i.h.bf16 %v586_v22  ;;  %v587_v35 = vunpack.i.l.bf16 %v586_v22 }
  0xcd   : > { %v354_v61 = vpop.permute.xlu0 %353 }
  0xce   : > { %v268_v47 = vsel %vm267_vm3, %v587_v35, %v588_v34  ;;  %v269_v49 = vsel %vm267_vm3, %v588_v34, %v562_v6 }
  0xcf   : > { %v369_v62 = vsel %vm361_vm5, %v269_v49, %v292_v58 }
  0xd3   : > { %v606_v57 = vpop.permute.xlu1 %605 }
  0xd4   : > { %v607_v60 = vunpack.i.l.bf16 %v606_v57  ;;  %v608_v0 = vunpack.i.h.bf16 %v606_v57 }
  0xd5   : > { %v356_v15 = vpop.permute.xlu0 %355 }
  0xd6   : > { %v360_v18 = vsel %vm357_vm0, %v354_v61, %v356_v15  ;;  %v246_v7 = vsel %vm245_vm7, %v607_v60, %v608_v0  ;;  %v247_v11 = vsel %vm245_vm7, %v608_v0, %v557_v14 }
  0xd7   : > { %521 = vmatpush.msk.msra.mxu2 %vm361_vm5, %v360_v18 }
  0xd9   : > { %443 = vmatpush.msra.mxu2 %v373_v27 }
  0xdb   : > { %444 = vmatpush.msra.mxu2 %v370_v32 }
  0xdd   : > { %445 = vmatpush.msra.mxu2 %v367_v37  ;;  %v352_v40 = vpop.permute.xlu0 %351 }
  0xde   : > { %v358_v44 = vsel %vm357_vm0, %v350_v21, %v352_v40  ;;  %v359_v45 = vsel %vm357_vm0, %v352_v40, %v354_v61  ;;  %v368_v61 = vsel %vm361_vm5, %v268_v47, %v291_v48 }
  0xdf   : > { %517 = vmatpush.msk.msra.mxu0 %vm361_vm5, %v358_v44  ;;  %519 = vmatpush.msk.msra.mxu1 %vm361_vm5, %v359_v45 }
  0xe0   : > { %446 = vmatpush.msra.mxu2 %v364_v46 }
  0xe1   : > { %403 = vmatpush.msra.mxu0 %v371_v51  ;;  %423 = vmatpush.msra.mxu1 %v372_v2 }
  0xe2   : > { %522 = vmatmul.msk.f32.vlgmr.msra.gmra.mxu2 %vm381_vm9, %v374_v50 }
  0xe3   : > { %404 = vmatpush.msra.mxu0 %v368_v61  ;;  %424 = vmatpush.msra.mxu1 %v369_v62 }
  0xe5   : > { %v601_v1 = vpop.permute.xlu0 %600 }
  0xe6   : > { %v603_v5 = vunpack.i.h.bf16 %v601_v1  ;;  %v602_v6 = vunpack.i.l.bf16 %v601_v1 }
  0xe8   : > { %v223_v8 = vsel %vm222_vm6, %v602_v6, %v603_v5  ;;  %v224_v9 = vsel %vm222_vm6, %v603_v5, %v552_v10 }
  0xe9   : > { %v365_v13 = vsel %vm361_vm5, %v223_v8, %v246_v7  ;;  %v366_v15 = vsel %vm361_vm5, %v224_v9, %v247_v11 }
  0xea   : > { %405 = vmatpush.msra.mxu0 %v365_v13  ;;  %425 = vmatpush.msra.mxu1 %v366_v15 }
  0xec   : > { %406 = vmatpush.msra.mxu0 %v362_v16  ;;  %426 = vmatpush.msra.mxu1 %v363_v55 }
  0xed   : > { %518 = vmatmul.msk.f32.vlgmr.msra.gmra.mxu0 %vm381_vm9, %v374_v50  ;;  %520 = vmatmul.msk.f32.vlgmr.msra.gmra.mxu1 %vm381_vm9, %v374_v50  ;;  %v379_v52 = vpop.permute.xlu0 %378 }
 0x165   : > { %v448_v54 = vpop.f32.mrf.mxu2 }
 0x166   : > { %v449_v10 = vadd.f32 %v448_v54, %v379_v52 }
 0x168   : > { %453 = vst [vmem:[%s170_s6 + $0x10] sm:$0xff] %v449_v10 }
 0x16a   : > { %v408_v3 = vpop.f32.mrf.mxu0  ;;  %v428_v14 = vpop.f32.mrf.mxu1 }
 0x16b   : > { %v409_v17 = vadd.f32 %v408_v3, %v379_v52  ;;  %v429_v18 = vadd.f32 %v428_v14, %v379_v52 }
 0x16d   : > { %451 = vst [vmem:[%s170_s6] sm:$0xff] %v409_v17 }
 0x16e   : > { %452 = vst [vmem:[%s170_s6 + $0x8] sm:$0xff] %v429_v18 }
 0x16f PF: > { %s13_s12 = sadd.s32 1, %s621_s12  }
 0x170   : > { %p10_p4 = scmp.ge.s32.totalorder %s13_s12, 4  }
 0x172   :  { %12 = sbr.rel (!%p10_p4) target bundleno = 1 (0x1), region = 75 }

</bundles_post_ra>
